<compile_context>
chip_gen: v5e
topology: v5e:2x2
jax: 0.10.0
libtpu: 0.0.40
codegen_flags: <defaults>
</compile_context>

<pallas_src>
import functools
import math

import jax
import jax.numpy as jnp
from jax.experimental import pallas as pl
from jax.experimental.pallas import tpu as pltpu

M1 = 0.8
M2 = 1.2
EPS = 1e-6  # F.pairwise_distance default eps (added to the difference before the norm)


def _contrastive_kernel(*refs, m1, m2, batch, group, tile_rows, tiles_per_core,
                        binary_labels):
    if group > 1:
        phi_i_ref, phi_j_ref, l_ref, seg_ref, out_ref, acc_ref = refs
    else:
        phi_i_ref, phi_j_ref, l_ref, out_ref, acc_ref = refs
        seg_ref = None

    c = pl.program_id(0)               # core-parallel axis (2 TCs on v7x, loop elsewhere)
    t = pl.program_id(1)               # sequential accumulator axis
    gt = c * tiles_per_core + t        # global (unclamped) tile id

    @pl.when(t == 0)
    def _init():
        acc_ref[...] = jnp.zeros_like(acc_ref)

    def contribution(apply_mask):
        x = phi_i_ref[...].astype(jnp.float32)
        y = phi_j_ref[...].astype(jnp.float32)
        diff = x - y + EPS                                     # pairwise_distance eps
        sq = diff * diff                                       # (tile_rows, PW) lane-dense

        if group > 1:
            # Segmented per-original-row sum via 0/1 block-diagonal matmul on the idle MXU.
            d2 = jnp.dot(sq, seg_ref[...], preferred_element_type=jnp.float32)
        else:
            d2 = jnp.sum(sq, axis=-1, keepdims=True)           # exact f32 lane reduce

        if apply_mask:
            # Only emitted for tiles overhanging the true batch: zero garbage rows *before*
            # sqrt/hinge so no uninitialized VMEM data reaches the math path.
            p_idx = gt * tile_rows + jax.lax.broadcasted_iota(jnp.int32, d2.shape, 0)
            g_idx = jax.lax.broadcasted_iota(jnp.int32, d2.shape, 1)
            valid = (p_idx * group + g_idx) < batch
            d2 = jnp.where(valid, d2, 0.0)

        d = jnp.sqrt(d2)
        l = l_ref[...].astype(jnp.float32)
        if binary_labels:
            # 6-op hinge for exactly-{0,1} labels.
            h = jnp.maximum(jnp.where(l > 0.5, m2 - d, d - m1), 0.0)
            per_row = 0.5 * h * h
        else:
            # Weighted form: valid for soft / non-binary labels.
            pos = jnp.maximum(d - m1, 0.0)
            neg = jnp.maximum(m2 - d, 0.0)
            per_row = 0.5 * ((1.0 - l) * (pos * pos) + l * (neg * neg))

        if apply_mask:
            per_row = jnp.where(valid, per_row, 0.0)

        # Elementwise VMEM accumulate (no per-step cross-lane reduce / SMEM RMW).
        acc_ref[...] += per_row

    rows_per_tile = tile_rows * group
    tile_end = (gt + 1) * rows_per_tile

    @pl.when(tile_end <= batch)        # interior tiles: no masking ops at all
    def _full_tile():
        contribution(apply_mask=False)

    @pl.when(tile_end > batch)         # final / overhang tiles: mask rows >= batch
    def _partial_tile():
        contribution(apply_mask=True)

    @pl.when(t == tiles_per_core - 1)
    def _finalize():
        partial = jnp.sum(acc_ref[...])
        r = jax.lax.broadcasted_iota(jnp.int32, out_ref.shape, 0)
        k = jax.lax.broadcasted_iota(jnp.int32, out_ref.shape, 1)
        out_ref[...] = jnp.where((r == 0) & (k == 0), partial, 0.0)


def _pick_tile_rows(packed_rows, packed_width, itemsize, budget_bytes=24 * 1024 * 1024):
    """Size the packed-row tile so the resident VMEM footprint (double-buffered phi tiles +
    lane-padded label tiles + f32 accumulator) stays near `budget_bytes`.  ~24 MiB keeps the
    ~0.35us/step pipeline overhead <10% and fits v7x's 64 MiB physical VMEM with headroom."""
    lane_w = ((packed_width + 127) // 128) * 128           # VMEM lanes pad to 128
    per_row_bytes = (2 * 2 * lane_w * itemsize              # phi_i/phi_j, double-buffered
                     + 2 * 128 * 4                          # label block (lane-padded), x2 buffers
                     + 128 * 4)                             # f32 accumulator (single buffer)
    t = budget_bytes // per_row_bytes
    t = max(8, (t // 8) * 8)
    t = min(t, 8192)
    padded_rows = ((packed_rows + 7) // 8) * 8
    return min(t, padded_rows)


def contrastive_loss_double(phi_i, phi_j, l_ij, m1=M1, m2=M2, *, binary_labels=True,
                            tile_rows=None, num_cores=2):
    """phi_i, phi_j: (B, D) float32/bfloat16; l_ij: (B,) labels.  Returns scalar mean loss.

    binary_labels=True uses the cheaper select-form hinge (labels must be exactly {0,1});
    set False for soft labels to keep the original weighted form.
    """
    B, D = phi_i.shape
    itemsize = jnp.dtype(phi_i.dtype).itemsize

    # ---- lane-dense packing for small D (free row-major reshape) -------------------------
    g = 128 // math.gcd(D, 128)
    if D >= 128 or g > 16 or g * D > 512:
        g = 1
    pw = g * D

    labels = l_ij.astype(jnp.float32).reshape(-1)
    if B % g:
        pad = g - (B % g)
        phi_i = jnp.pad(phi_i, ((0, pad), (0, 0)))
        phi_j = jnp.pad(phi_j, ((0, pad), (0, 0)))
        labels = jnp.pad(labels, (0, pad))
    pb = phi_i.shape[0] // g                        # packed rows
    phi_i_p = phi_i.reshape(pb, pw)
    phi_j_p = phi_j.reshape(pb, pw)
    labels_p = labels.reshape(pb, g)

    if tile_rows is None:
        tile_rows = _pick_tile_rows(pb, pw, itemsize)
    n_tiles = pl.cdiv(pb, tile_rows)
    num_cores = max(1, int(num_cores))
    tiles_per_core = pl.cdiv(n_tiles, num_cores)

    def row_block(c, t):
        # Clamp so overhang tiles (when n_tiles doesn't divide evenly across cores) never
        # issue an out-of-range DMA; their contribution is masked to zero in the kernel.
        return (jnp.minimum(c * tiles_per_core + t, n_tiles - 1), 0)

    in_specs = [pl.BlockSpec((tile_rows, pw), row_block),
                pl.BlockSpec((tile_rows, pw), row_block),
                pl.BlockSpec((tile_rows, g), row_block)]
    args = [phi_i_p, phi_j_p, labels_p]
    if g > 1:
        # 0/1 block-diagonal segment matrix (pw, g): constant block index -> fetched once.
        lane = jnp.arange(pw, dtype=jnp.int32)[:, None]
        seg = (lane // D == jnp.arange(g, dtype=jnp.int32)[None, :]).astype(jnp.float32)
        in_specs.append(pl.BlockSpec((pw, g), lambda c, t: (0, 0)))
        args.append(seg)

    kernel = functools.partial(
        _contrastive_kernel, m1=float(m1), m2=float(m2), batch=B, group=g,
        tile_rows=tile_rows, tiles_per_core=tiles_per_core, binary_labels=binary_labels)

    cost = pl.CostEstimate(
        flops=3 * B * D + 10 * B,
        transcendentals=B,
        bytes_accessed=2 * B * D * itemsize + B * 4 + num_cores * 8 * 128 * 4)

    out = pl.pallas_call(
        kernel,
        out_shape=jax.ShapeDtypeStruct((num_cores * 8, 128), jnp.float32),
        grid=(num_cores, tiles_per_core),
        in_specs=in_specs,
        out_specs=pl.BlockSpec((8, 128), lambda c, t: (c, 0)),
        scratch_shapes=[pltpu.VMEM((tile_rows, g), jnp.float32)],
        compiler_params=pltpu.CompilerParams(
            dimension_semantics=("parallel", "arbitrary"),
            vmem_limit_bytes=48 * 1024 * 1024),
        cost_estimate=cost,
    )(*args)

    # Per-core partial sums live at rows {0, 8, ...}, col 0; everything else is zero.
    return jnp.sum(out) / B


def _reference_loss(phi_i, phi_j, l_ij, m1=M1, m2=M2):
    diff = phi_i.astype(jnp.float32) - phi_j.astype(jnp.float32) + EPS
    d = jnp.sqrt(jnp.sum(diff * diff, axis=-1))
    lf = l_ij.astype(jnp.float32)
    return jnp.mean(0.5 * (1.0 - lf) * jnp.maximum(d - m1, 0.0) ** 2
                    + 0.5 * lf * jnp.maximum(m2 - d, 0.0) ** 2)


if __name__ == "__main__":
    key = jax.random.PRNGKey(0)

    def run_case(case_key, B, D, **kw):
        k1, k2, k3 = jax.random.split(case_key, 3)
        phi_i = jax.random.normal(k1, (B, D), dtype=jnp.float32)
        phi_j = jax.random.normal(k2, (B, D), dtype=jnp.float32)
        l_ij = jax.random.bernoulli(k3, 0.5, (B,)).astype(jnp.int32)
        loss = jax.block_until_ready(contrastive_loss_double(phi_i, phi_j, l_ij, **kw))
        ref = jax.block_until_ready(_reference_loss(phi_i, phi_j, l_ij))
        # Tolerance covers the MXU-based segmented reduce (backend default matmul precision).
        tol = 5e-3 * max(1.0, abs(float(ref)))
        assert abs(float(loss) - float(ref)) <= tol, (B, D, float(loss), float(ref))

    k1, k2, k3 = jax.random.split(key, 3)
    # 1) Packed path (D=32 -> G=4), wrapper row-padding, masked remainder tile.
    run_case(k1, B=10, D=32)
    # 2) Multi-tile: one full (unmasked) tile on core 0 + one partial (masked) tile on core 1.
    run_case(k2, B=40, D=32, tile_rows=8)
    # 3) group==1 fallback path (D >= 128, exact lane reduce).
    run_case(k3, B=24, D=160)

    print("KERNEL_OK")
</pallas_src>

<mosaic_0001>
module attributes {stable_mosaic.version = 11 : i64} {
  func.func @_contrastive_kernel(%arg0: i32, %arg1: i32, %arg2: memref<8x128xf32, #tpu.memory_space<vmem>>, %arg3: memref<8x128xf32, #tpu.memory_space<vmem>>, %arg4: memref<8x4xf32, #tpu.memory_space<vmem>>, %arg5: memref<128x4xf32, #tpu.memory_space<vmem>>, %arg6: memref<8x128xf32, #tpu.memory_space<vmem>>, %arg7: memref<8x4xf32, #tpu.memory_space<vmem>>) attributes {dimension_semantics = [#tpu.dimension_semantics<parallel>, #tpu.dimension_semantics<arbitrary>], iteration_bounds = array<i64: 2, 1>, scalar_prefetch = 0 : i64, scratch_operands = 1 : i64, tpu.core_type = #tpu.core_type<tc>, window_params = [{transform_indices = @transform_0, window_bounds = array<i64: 8, 128>}, {transform_indices = @transform_1, window_bounds = array<i64: 8, 128>}, {transform_indices = @transform_2, window_bounds = array<i64: 8, 4>}, {pipeline_mode = #tpu.pipeline_mode<synchronous>, transform_indices = @transform_3, window_bounds = array<i64: 128, 4>}, {transform_indices = @transform_4, window_bounds = array<i64: 8, 128>}]} {
    %c1_i32 = arith.constant 1 : i32
    %0 = arith.muli %arg0, %c1_i32 : i32
    %1 = arith.addi %0, %arg1 : i32
    %c0_i32 = arith.constant 0 : i32
    %2 = arith.cmpi eq, %arg1, %c0_i32 : i32
    %3 = arith.extui %2 : i1 to i32
    %c0_i32_0 = arith.constant 0 : i32
    %4 = arith.cmpi ne, %3, %c0_i32_0 : i32
    scf.if %4 {
      %cst = arith.constant 0.000000e+00 : f32
      %16 = vector.broadcast %cst : f32 to vector<8x4xf32>
      %c0 = arith.constant 0 : index
      %c0_7 = arith.constant 0 : index
      %17 = vector.load %arg7[%c0, %c0_7] : memref<8x4xf32, #tpu.memory_space<vmem>>, vector<8x4xf32>
      tpu.vector_store %arg7[%c0, %c0_7], %16 {strides = array<i32>} : memref<8x4xf32, #tpu.memory_space<vmem>>, vector<8x4xf32>,
    } else {
    }
    %c1_i32_1 = arith.constant 1 : i32
    %5 = arith.addi %1, %c1_i32_1 : i32
    %c32_i32 = arith.constant 32 : i32
    %6 = arith.muli %5, %c32_i32 : i32
    %c10_i32 = arith.constant 10 : i32
    %7 = arith.cmpi sle, %6, %c10_i32 : i32
    %8 = arith.extui %7 : i1 to i32
    %c0_i32_2 = arith.constant 0 : i32
    %9 = arith.cmpi ne, %8, %c0_i32_2 : i32
    scf.if %9 {
      %c0 = arith.constant 0 : index
      %c0_7 = arith.constant 0 : index
      %16 = vector.load %arg2[%c0, %c0_7] : memref<8x128xf32, #tpu.memory_space<vmem>>, vector<8x128xf32>
      %c0_8 = arith.constant 0 : index
      %c0_9 = arith.constant 0 : index
      %17 = vector.load %arg3[%c0_8, %c0_9] : memref<8x128xf32, #tpu.memory_space<vmem>>, vector<8x128xf32>
      %18 = arith.subf %16, %17 : vector<8x128xf32>
      %cst = arith.constant 9.99999997E-7 : f32
      %19 = vector.broadcast %cst : f32 to vector<8x128xf32>
      %20 = arith.addf %18, %19 : vector<8x128xf32>
      %21 = arith.mulf %20, %20 : vector<8x128xf32>
      %c0_10 = arith.constant 0 : index
      %c0_11 = arith.constant 0 : index
      %22 = vector.load %arg5[%c0_10, %c0_11] : memref<128x4xf32, #tpu.memory_space<vmem>>, vector<128x4xf32>
      %cst_12 = arith.constant dense<0.000000e+00> : vector<8x4xf32>
      %23 = tpu.matmul %21, %22, %cst_12 {dimension_numbers = #tpu.dot_dimension_numbers<[1], [0], [0], [1], [0, 0, 1, 1], [], []>} : vector<8x128xf32>, vector<128x4xf32>, vector<8x4xf32> -> vector<8x4xf32>
      %24 = math.sqrt %23 : vector<8x4xf32>
      %c0_13 = arith.constant 0 : index
      %c0_14 = arith.constant 0 : index
      %25 = vector.load %arg4[%c0_13, %c0_14] : memref<8x4xf32, #tpu.memory_space<vmem>>, vector<8x4xf32>
      %cst_15 = arith.constant 5.000000e-01 : f32
      %26 = vector.broadcast %cst_15 : f32 to vector<8x4xf32>
      %27 = arith.cmpf ogt, %25, %26 : vector<8x4xf32>
      %cst_16 = arith.constant 1.200000e+00 : f32
      %28 = vector.broadcast %cst_16 : f32 to vector<8x4xf32>
      %29 = arith.subf %28, %24 : vector<8x4xf32>
      %cst_17 = arith.constant 8.000000e-01 : f32
      %30 = vector.broadcast %cst_17 : f32 to vector<8x4xf32>
      %31 = arith.subf %24, %30 : vector<8x4xf32>
      %32 = arith.select %27, %29, %31 : vector<8x4xi1>, vector<8x4xf32>
      %cst_18 = arith.constant 0.000000e+00 : f32
      %33 = vector.broadcast %cst_18 : f32 to vector<8x4xf32>
      %34 = arith.maximumf %32, %33 : vector<8x4xf32>
      %cst_19 = arith.constant 5.000000e-01 : f32
      %35 = vector.broadcast %cst_19 : f32 to vector<8x4xf32>
      %36 = arith.mulf %35, %34 : vector<8x4xf32>
      %37 = arith.mulf %36, %34 : vector<8x4xf32>
      %c0_20 = arith.constant 0 : index
      %c0_21 = arith.constant 0 : index
      %38 = vector.load %arg7[%c0_20, %c0_21] : memref<8x4xf32, #tpu.memory_space<vmem>>, vector<8x4xf32>
      %39 = arith.addf %38, %37 : vector<8x4xf32>
      %c0_22 = arith.constant 0 : index
      %c0_23 = arith.constant 0 : index
      %40 = vector.load %arg7[%c0_22, %c0_23] : memref<8x4xf32, #tpu.memory_space<vmem>>, vector<8x4xf32>
      tpu.vector_store %arg7[%c0_22, %c0_23], %39 {strides = array<i32>} : memref<8x4xf32, #tpu.memory_space<vmem>>, vector<8x4xf32>,
    } else {
    }
    %c10_i32_3 = arith.constant 10 : i32
    %10 = arith.cmpi sgt, %6, %c10_i32_3 : i32
    %11 = arith.extui %10 : i1 to i32
    %c0_i32_4 = arith.constant 0 : i32
    %12 = arith.cmpi ne, %11, %c0_i32_4 : i32
    scf.if %12 {
      %c0 = arith.constant 0 : index
      %c0_7 = arith.constant 0 : index
      %16 = vector.load %arg2[%c0, %c0_7] : memref<8x128xf32, #tpu.memory_space<vmem>>, vector<8x128xf32>
      %c0_8 = arith.constant 0 : index
      %c0_9 = arith.constant 0 : index
      %17 = vector.load %arg3[%c0_8, %c0_9] : memref<8x128xf32, #tpu.memory_space<vmem>>, vector<8x128xf32>
      %18 = arith.subf %16, %17 : vector<8x128xf32>
      %cst = arith.constant 9.99999997E-7 : f32
      %19 = vector.broadcast %cst : f32 to vector<8x128xf32>
      %20 = arith.addf %18, %19 : vector<8x128xf32>
      %21 = arith.mulf %20, %20 : vector<8x128xf32>
      %c0_10 = arith.constant 0 : index
      %c0_11 = arith.constant 0 : index
      %22 = vector.load %arg5[%c0_10, %c0_11] : memref<128x4xf32, #tpu.memory_space<vmem>>, vector<128x4xf32>
      %cst_12 = arith.constant dense<0.000000e+00> : vector<8x4xf32>
      %23 = tpu.matmul %21, %22, %cst_12 {dimension_numbers = #tpu.dot_dimension_numbers<[1], [0], [0], [1], [0, 0, 1, 1], [], []>} : vector<8x128xf32>, vector<128x4xf32>, vector<8x4xf32> -> vector<8x4xf32>
      %c8_i32 = arith.constant 8 : i32
      %24 = arith.muli %1, %c8_i32 : i32
      %25 = tpu.iota {dimensions = array<i32: 0>} : vector<8x4xi32>
      %26 = vector.broadcast %24 : i32 to vector<8x4xi32>
      %27 = arith.addi %26, %25 : vector<8x4xi32>
      %28 = tpu.iota {dimensions = array<i32: 1>} : vector<8x4xi32>
      %c4_i32 = arith.constant 4 : i32
      %29 = vector.broadcast %c4_i32 : i32 to vector<8x4xi32>
      %30 = arith.muli %27, %29 : vector<8x4xi32>
      %31 = arith.addi %30, %28 : vector<8x4xi32>
      %c10_i32_13 = arith.constant 10 : i32
      %32 = vector.broadcast %c10_i32_13 : i32 to vector<8x4xi32>
      %33 = arith.cmpi slt, %31, %32 : vector<8x4xi32>
      %cst_14 = arith.constant 0.000000e+00 : f32
      %34 = vector.broadcast %cst_14 : f32 to vector<8x4xf32>
      %35 = arith.select %33, %23, %34 : vector<8x4xi1>, vector<8x4xf32>
      %36 = math.sqrt %35 : vector<8x4xf32>
      %c0_15 = arith.constant 0 : index
      %c0_16 = arith.constant 0 : index
      %37 = vector.load %arg4[%c0_15, %c0_16] : memref<8x4xf32, #tpu.memory_space<vmem>>, vector<8x4xf32>
      %cst_17 = arith.constant 5.000000e-01 : f32
      %38 = vector.broadcast %cst_17 : f32 to vector<8x4xf32>
      %39 = arith.cmpf ogt, %37, %38 : vector<8x4xf32>
      %cst_18 = arith.constant 1.200000e+00 : f32
      %40 = vector.broadcast %cst_18 : f32 to vector<8x4xf32>
      %41 = arith.subf %40, %36 : vector<8x4xf32>
      %cst_19 = arith.constant 8.000000e-01 : f32
      %42 = vector.broadcast %cst_19 : f32 to vector<8x4xf32>
      %43 = arith.subf %36, %42 : vector<8x4xf32>
      %44 = arith.select %39, %41, %43 : vector<8x4xi1>, vector<8x4xf32>
      %cst_20 = arith.constant 0.000000e+00 : f32
      %45 = vector.broadcast %cst_20 : f32 to vector<8x4xf32>
      %46 = arith.maximumf %44, %45 : vector<8x4xf32>
      %cst_21 = arith.constant 5.000000e-01 : f32
      %47 = vector.broadcast %cst_21 : f32 to vector<8x4xf32>
      %48 = arith.mulf %47, %46 : vector<8x4xf32>
      %49 = arith.mulf %48, %46 : vector<8x4xf32>
      %cst_22 = arith.constant 0.000000e+00 : f32
      %50 = vector.broadcast %cst_22 : f32 to vector<8x4xf32>
      %51 = arith.select %33, %49, %50 : vector<8x4xi1>, vector<8x4xf32>
      %c0_23 = arith.constant 0 : index
      %c0_24 = arith.constant 0 : index
      %52 = vector.load %arg7[%c0_23, %c0_24] : memref<8x4xf32, #tpu.memory_space<vmem>>, vector<8x4xf32>
      %53 = arith.addf %52, %51 : vector<8x4xf32>
      %c0_25 = arith.constant 0 : index
      %c0_26 = arith.constant 0 : index
      %54 = vector.load %arg7[%c0_25, %c0_26] : memref<8x4xf32, #tpu.memory_space<vmem>>, vector<8x4xf32>
      tpu.vector_store %arg7[%c0_25, %c0_26], %53 {strides = array<i32>} : memref<8x4xf32, #tpu.memory_space<vmem>>, vector<8x4xf32>,
    } else {
    }
    %c0_i32_5 = arith.constant 0 : i32
    %13 = arith.cmpi eq, %arg1, %c0_i32_5 : i32
    %14 = arith.extui %13 : i1 to i32
    %c0_i32_6 = arith.constant 0 : i32
    %15 = arith.cmpi ne, %14, %c0_i32_6 : i32
    scf.if %15 {
      %c0 = arith.constant 0 : index
      %c0_7 = arith.constant 0 : index
      %16 = vector.load %arg7[%c0, %c0_7] : memref<8x4xf32, #tpu.memory_space<vmem>>, vector<8x4xf32>
      %17 = vector.shape_cast %16 : vector<8x4xf32> to vector<1x8x4xf32>
      %cst = arith.constant dense<0.000000e+00> : vector<1xf32>
      %18 = vector.multi_reduction <add>, %17, %cst [1, 2] : vector<1x8x4xf32> to vector<1xf32>
      %19 = vector.shape_cast %18 : vector<1xf32> to vector<1x1x1xf32>
      %20 = vector.extract %19[0, 0, 0] : f32 from vector<1x1x1xf32>
      %21 = tpu.iota {dimensions = array<i32: 0>} : vector<8x128xi32>
      %22 = tpu.iota {dimensions = array<i32: 1>} : vector<8x128xi32>
      %c0_i32_8 = arith.constant 0 : i32
      %23 = vector.broadcast %c0_i32_8 : i32 to vector<8x128xi32>
      %24 = arith.cmpi eq, %21, %23 : vector<8x128xi32>
      %c0_i32_9 = arith.constant 0 : i32
      %25 = vector.broadcast %c0_i32_9 : i32 to vector<8x128xi32>
      %26 = arith.cmpi eq, %22, %25 : vector<8x128xi32>
      %27 = arith.andi %24, %26 : vector<8x128xi1>
      %cst_10 = arith.constant 0.000000e+00 : f32
      %28 = vector.broadcast %20 : f32 to vector<8x128xf32>
      %29 = vector.broadcast %cst_10 : f32 to vector<8x128xf32>
      %30 = arith.select %27, %28, %29 : vector<8x128xi1>, vector<8x128xf32>
      %c0_11 = arith.constant 0 : index
      %c0_12 = arith.constant 0 : index
      %31 = vector.load %arg6[%c0_11, %c0_12] : memref<8x128xf32, #tpu.memory_space<vmem>>, vector<8x128xf32>
      tpu.vector_store %arg6[%c0_11, %c0_12], %30 {strides = array<i32>} : memref<8x128xf32, #tpu.memory_space<vmem>>, vector<8x128xf32>,
    } else {
    }
    return
  }
  func.func @transform_0(%arg0: i32, %arg1: i32) -> (i32, i32) {
    %c1_i32 = arith.constant 1 : i32
    %0 = arith.muli %arg0, %c1_i32 : i32
    %1 = arith.addi %0, %arg1 : i32
    %c0_i32 = arith.constant 0 : i32
    %2 = arith.minsi %1, %c0_i32 : i32
    %c0_i32_0 = arith.constant 0 : i32
    %c0_i32_1 = arith.constant 0 : i32
    return %2, %c0_i32_0 : i32, i32
  }
  func.func @transform_1(%arg0: i32, %arg1: i32) -> (i32, i32) {
    %c1_i32 = arith.constant 1 : i32
    %0 = arith.muli %arg0, %c1_i32 : i32
    %1 = arith.addi %0, %arg1 : i32
    %c0_i32 = arith.constant 0 : i32
    %2 = arith.minsi %1, %c0_i32 : i32
    %c0_i32_0 = arith.constant 0 : i32
    %c0_i32_1 = arith.constant 0 : i32
    return %2, %c0_i32_0 : i32, i32
  }
  func.func @transform_2(%arg0: i32, %arg1: i32) -> (i32, i32) {
    %c1_i32 = arith.constant 1 : i32
    %0 = arith.muli %arg0, %c1_i32 : i32
    %1 = arith.addi %0, %arg1 : i32
    %c0_i32 = arith.constant 0 : i32
    %2 = arith.minsi %1, %c0_i32 : i32
    %c0_i32_0 = arith.constant 0 : i32
    %c0_i32_1 = arith.constant 0 : i32
    return %2, %c0_i32_0 : i32, i32
  }
  func.func @transform_3(%arg0: i32, %arg1: i32) -> (i32, i32) {
    %c0_i32 = arith.constant 0 : i32
    %c0_i32_0 = arith.constant 0 : i32
    %c0_i32_1 = arith.constant 0 : i32
    return %c0_i32, %c0_i32_0 : i32, i32
  }
  func.func @transform_4(%arg0: i32, %arg1: i32) -> (i32, i32) {
    %c0_i32 = arith.constant 0 : i32
    %c0_i32_0 = arith.constant 0 : i32
    return %arg0, %c0_i32 : i32, i32
  }
}

</mosaic_0001>

<bundles_post_ra>
// kernel: tpu_custom_call.1
= control target key start
LH: loop header
LB: loop body
LE: loop exit
PB: predicated region body
PF: predicated region fallthrough
CT: control target
= control target key end

     0   :  { %9 = vsyncpa [#allocation4], 0  ;;  %s1064_s0 = inlined_call_operand.vmem [shape: f32[3,128], index: 0, kind: input, shape index: {}]   ;;  %s1065_s1 = inlined_call_operand.vmem [shape: f32[3,128], index: 1, kind: input, shape index: {}]   ;;  %s1066_s2 = inlined_call_operand.vmem [shape: f32[3,4], index: 2, kind: input, shape index: {}]   ;;  %s1067_s3 = inlined_call_operand.vmem [shape: f32[128,4], index: 3, kind: input, shape index: {}]   ;;  %s1068_s4 = inlined_call_operand.hbm [shape: f32[16,128], index: 4, kind: output, shape index: {}]  }
   0x1   :  { %11 = vsyncpa [#allocation4 + $0x1], 0  ;;  %s830_s15 = smov 0   ;;  %s832_s16 = smov 0  }
   0x2   :  { %s834_s17 = smov 0   ;;  %s836_s18 = smov 0  }
   0x3   :  { %s838_s19 = smov 0   ;;  %s840_s20 = smov 0  }
   0x4 LB: > { %s638_s21 = sadd.s32 4294967295, %s802_s20   ;;  %s639_s22 = sadd.s32 4294967294, %s802_s20   ;;  %s802_s20 = sphi %s840_s20, %s17_s20   ;;  %s798_s19 = sphi %s838_s19, %s1077_s19   ;;  %s794_s18 = sphi %s836_s18, %s1076_s18   ;;  %s790_s17 = sphi %s834_s17, %s1075_s17   ;;  %s786_s16 = sphi %s832_s16, %s1074_s16   ;;  %s782_s15 = sphi %s830_s15, %s1073_s15  }
   0x5   : > { %s29_s23 = sadd.s32 1, %s798_s19  ;;  %s153_s24 = sadd.s32 1, %s790_s17 }
   0x6   : > { %p31_p0 = scmp.ge.s32.totalorder %s29_s23, 2  ;;  %p163_p1 = scmp.ne.s32.totalorder %s790_s17, %s786_s16 }
   0x7   : > { %p164_p2 = scmp.eq.s32.totalorder %s638_s21, 1  ;;  %p169_p3 = scmp.ne.s32.totalorder %s786_s16, %s782_s15 }
   0x8   : > { %s1079_s23 = smov (%p31_p0, %s29_s23), 0  ;;  %p170_p5 = scmp.eq.s32.totalorder %s639_s22, 1 }
   0x9   : > { %p870_p4 = por %p164_p2, %p163_p1  ;;  %s150_s26 = ssub.s32 %s798_s19, %s1079_s23 }
   0xa   : > { %p642_p6 = scmp.ge.s32.totalorder %s802_s20, 1  ;;  %p151_p7 = scmp.eq.s32.totalorder %s150_s26, 0 }
   0xb   : > { %p877_p8 = por %p170_p5, %p169_p3  ;;  %p248_p9 = scmp.lt.s32.totalorder %s802_s20, 3 }
   0xc   : > { %s883_s28 = scalar_select %p151_p7, %s790_s17, %s153_s24  }
   0xd   : > { %p249_p10 = pnand %p642_p6, %p248_p9 }
   0xe   : > { %s1069_s29 = sand.u32 (!%p249_p10), 1, %s786_s16   ;;  %p300_p11 = scmp.lt.s32.totalorder (!%p249_p10), %s794_s18, 0 }
   0xf   : > { %252 = sbr.rel (%p249_p10) target bundleno = 611 (0x263), region = 36  ;;  %s889_s30 = sshll.u32 (!%p249_p10), %s1069_s29, 3 }
  0x10   : > { %s660_s5 = sshll.u32 (!%p249_p10), %s794_s18, 5 }
  0x11   : > { %s893_s6 = sadd.s32 (!%p249_p10), 32, %s660_s5  ;;  %s298_s5 = scalar_lea.vmem (!%p249_p10), [#allocation3], %s889_s30 }
  0x12   : > { %p651_p13 = scmp.gt.s32.totalorder (!%p249_p10), %s893_s6, 10 }
  0x14   : > { %vm352_vm0 = vcmask 31744   ;;  %v804_v0 = vmov 0.0   ;;  %s301_s7 = scalar_select %p300_p11, %s794_s18, 0 }
  0x15   : > { %353 = vst.msk [vmem:[#allocation2] sm:$0xff] %vm352_vm0, %v804_v0 }
  0x16   : > { %s644_s8 = sshll.u32 %s301_s7, 1 }
  0x17   : > { %p305_p12 = scmp.lt.s32.totalorder %s644_s8, 0 }
  0x18   : > { %359 = sbr.rel (%p651_p13) target bundleno = 220 (0xdc), region = 44 }
  0x19   : > { %s1081_s8 = smov (!%p305_p12, %s644_s8), 0 }
  0x1a   : > { %s645_s9 = sshll.u32 %s1081_s8, 2 }
  0x1b   : > { %s899_s12 = scalar_lea.vmem %s1064_s0, %s645_s9  ;;  %s904_s21 = scalar_lea.vmem %s1065_s1, %s645_s9 }
  0x1c   : > { %s909_s26 = scalar_lea.vmem %s1066_s2, %s645_s9 }
  0x1d   : > { %v380_v1 = vld [vmem:[%s1067_s3 + $0x78] sm:$0xff]  ;;  %v379_v2 = vld [vmem:[%s1067_s3 + $0x70] sm:$0xff]  ;;  %v378_v3 = vld [vmem:[%s1067_s3 + $0x68] sm:$0xff] }
  0x1e   : > { %381 = vmatpush.msra.mxu0 %v380_v1  ;;  %v377_v4 = vld [vmem:[%s1067_s3 + $0x60] sm:$0xff]  ;;  %v376_v5 = vld [vmem:[%s1067_s3 + $0x58] sm:$0xff]  ;;  %v375_v6 = vld [vmem:[%s1067_s3 + $0x50] sm:$0xff] }
  0x1f   : > { %v374_v7 = vld [vmem:[%s1067_s3 + $0x48] sm:$0xff]  ;;  %v373_v8 = vld [vmem:[%s1067_s3 + $0x40] sm:$0xff]  ;;  %v372_v9 = vld [vmem:[%s1067_s3 + $0x38] sm:$0xff] }
  0x20   : > { %382 = vmatpush.msra.mxu0 %v379_v2  ;;  %v371_v10 = vld [vmem:[%s1067_s3 + $0x30] sm:$0xff]  ;;  %v360_v11 = vld [vmem:[%s899_s12] sm:$0xff]  ;;  %v370_v13 = vld [vmem:[%s1067_s3 + $0x28] sm:$0xff] }
  0x21   : > { %v361_v12 = vld [vmem:[%s904_s21] sm:$0xff]  ;;  %v368_v16 = vld [vmem:[%s1067_s3 + $0x18] sm:$0xff]  ;;  %v367_v17 = vld [vmem:[%s1067_s3 + $0x10] sm:$0xff] }
  0x22   : > { %383 = vmatpush.msra.mxu0 %v378_v3  ;;  %v369_v14 = vld [vmem:[%s1067_s3 + $0x20] sm:$0xff]  ;;  %v362_v15 = vsub.f32 %v360_v11, %v361_v12  ;;  %v366_v19 = vld [vmem:[%s1067_s3 + $0x8] sm:$0xff] }
  0x23   : > { %v365_v20 = vld [vmem:[%s1067_s3] sm:$0xff] }
  0x24   : > { %384 = vmatpush.msra.mxu0 %v377_v4  ;;  %v363_v18 = vadd.f32 1e-06, %v362_v15  ;;  %v413_v30 = vld [vmem:[%s909_s26] sm:$0xff] }
  0x25   : > { %vm414_vm3 = vcmp.gt.f32.partialorder %v413_v30, 0.5  ;;  %v421_v39 = vld [vmem:[#allocation2] sm:$0xff] }
  0x26   : > { %385 = vmatpush.msra.mxu0 %v376_v5  ;;  %v364_v21 = vmul.f32 %v363_v18, %v363_v18 }
  0x28   : > { %386 = vmatpush.msra.mxu0 %v375_v6 }
  0x2a   : > { %387 = vmatpush.msra.mxu0 %v374_v7 }
  0x2c   : > { %388 = vmatpush.msra.mxu0 %v373_v8 }
  0x2e   : > { %389 = vmatpush.msra.mxu0 %v372_v9 }
  0x30   : > { %390 = vmatpush.msra.mxu0 %v371_v10 }
  0x32   : > { %391 = vmatpush.msra.mxu0 %v370_v13 }
  0x34   : > { %392 = vmatpush.msra.mxu0 %v369_v14 }
  0x36   : > { %393 = vmatpush.msra.mxu0 %v368_v16 }
  0x38   : > { %394 = vmatpush.msra.mxu0 %v367_v17 }
  0x3a   : > { %395 = vmatpush.msra.mxu0 %v366_v19 }
  0x3c   : > { %396 = vmatpush.msra.mxu0 %v365_v20 }
  0x3d   : > { %397 = vmatmul.f32.vlgmr.msra.gmra.mxu0 %v364_v21 }
  0xba   : > { %v398_v22 = vpop.f32.mrf.mxu0 }
  0xbb   : > { %720 = vrsqrt.f32 %v398_v22  ;;  %vm408_vm1 = vcmp.eq.f32.partialorder %v398_v22, inf  ;;  %v411_v31 = vand.u32 2147483648, %v398_v22  ;;  %vm410_vm2 = vcmp.eq.f32.partialorder %v398_v22, 0.0 }
  0xc1   : > { %v721_v23 = vpop.eup %720 }
  0xc2   : > { %v402_v24 = vmul.f32 %v721_v23, %v398_v22 }
  0xc4   : > { %v403_v25 = vmul.f32 %v721_v23, %v402_v24 }
  0xc6   : > { %v404_v26 = vmul.f32 0.5, %v403_v25 }
  0xc8   : > { %v405_v27 = vsub.f32 1.5, %v404_v26 }
  0xca   : > { %v406_v28 = vmul.f32 %v721_v23, %v405_v27 }
  0xcc   : > { %v407_v29 = vmul.f32 %v406_v28, %v398_v22 }
  0xce   : > { %v409_v32 = vsel %vm408_vm1, %v398_v22, %v407_v29 }
  0xcf   : > { %v412_v33 = vsel %vm410_vm2, %v411_v31, %v409_v32 }
  0xd0   : > { %v415_v34 = vsub.f32 1.2, %v412_v33  ;;  %v652_v35 = vadd.f32 -0.8, %v412_v33 }
  0xd2   : > { %v417_v36 = vsel %vm414_vm3, %v415_v34, %v652_v35 }
  0xd3   : > { %v418_v37 = vmax.f32 %v417_v36, 0.0 }
  0xd5   : > { %v419_v38 = vmul.f32 0.5, %v418_v37 }
  0xd7   : > { %v420_v40 = vmul.f32 %v419_v38, %v418_v37 }
  0xd9   : > { %v422_v41 = vadd.f32 %v421_v39, %v420_v40 }
  0xdb   : > { %424 = vst.msk [vmem:[#allocation2] sm:$0xff] %vm352_vm0, %v422_v41 }
  0xdc PF: > { %p653_p0 = scmp.le.s32.totalorder %s893_s6, 10 }
  0xdd   : > { %s654_s6 = sshll.u32 (!%p653_p0), %s794_s18, 3 }
  0xde   : > { %428 = sbr.rel (%p653_p0) target bundleno = 420 (0x1a4), region = 48 }
  0xe3   : > { %v449_v42 = vld [vmem:[%s1067_s3 + $0x78] sm:$0xff]  ;;  %v448_v43 = vld [vmem:[%s1067_s3 + $0x70] sm:$0xff]  ;;  %v447_v44 = vld [vmem:[%s1067_s3 + $0x68] sm:$0xff]  ;;  %v471_v63 = vlaneseq  ;;  %v473_v1 = vstv %s654_s6 }
  0xe4   : > { %450 = vmatpush.msra.mxu0 %v449_v42  ;;  %v446_v45 = vld [vmem:[%s1067_s3 + $0x60] sm:$0xff]  ;;  %v445_v46 = vld [vmem:[%s1067_s3 + $0x58] sm:$0xff]  ;;  %v444_v47 = vld [vmem:[%s1067_s3 + $0x50] sm:$0xff] }
  0xe5   : > { %v443_v48 = vld [vmem:[%s1067_s3 + $0x48] sm:$0xff]  ;;  %v442_v49 = vld [vmem:[%s1067_s3 + $0x40] sm:$0xff]  ;;  %v441_v50 = vld [vmem:[%s1067_s3 + $0x38] sm:$0xff]  ;;  %v472_v0 = vshrl.u32 %v471_v63, 7  ;;  %v476_v3 = vand.u32 127, %v471_v63 }
  0xe6   : > { %451 = vmatpush.msra.mxu0 %v448_v43  ;;  %v440_v51 = vld [vmem:[%s1067_s3 + $0x30] sm:$0xff]  ;;  %v429_v52 = vld [vmem:[%s899_s12] sm:$0xff]  ;;  %v439_v54 = vld [vmem:[%s1067_s3 + $0x28] sm:$0xff] }
  0xe7   : > { %v430_v53 = vld [vmem:[%s904_s21] sm:$0xff]  ;;  %v437_v57 = vld [vmem:[%s1067_s3 + $0x18] sm:$0xff]  ;;  %v436_v58 = vld [vmem:[%s1067_s3 + $0x10] sm:$0xff]  ;;  %v474_v2 = vadd.s32 %v473_v1, %v472_v0 }
  0xe8   : > { %452 = vmatpush.msra.mxu0 %v447_v44  ;;  %v438_v55 = vld [vmem:[%s1067_s3 + $0x20] sm:$0xff]  ;;  %v431_v56 = vsub.f32 %v429_v52, %v430_v53  ;;  %v435_v60 = vld [vmem:[%s1067_s3 + $0x8] sm:$0xff] }
  0xe9   : > { %v434_v61 = vld [vmem:[%s1067_s3] sm:$0xff]  ;;  %v477_v4 = vmul.u32 4, %v474_v2 }
  0xea   : > { %453 = vmatpush.msra.mxu0 %v446_v45  ;;  %v432_v59 = vadd.f32 1e-06, %v431_v56  ;;  %v493_v15 = vld [vmem:[%s909_s26] sm:$0xff] }
  0xeb   : > { %v478_v5 = vadd.s32 %v477_v4, %v476_v3  ;;  %vm494_vm7 = vcmp.gt.f32.partialorder %v493_v15, 0.5  ;;  %v502_v25 = vld [vmem:[#allocation2] sm:$0xff] }
  0xec   : > { %454 = vmatpush.msra.mxu0 %v445_v46  ;;  %v433_v62 = vmul.f32 %v432_v59, %v432_v59 }
  0xed   : > { %vm479_vm4 = vcmp.lt.s32.totalorder %v478_v5, 10 }
  0xee   : > { %455 = vmatpush.msra.mxu0 %v444_v47 }
  0xf0   : > { %456 = vmatpush.msra.mxu0 %v443_v48 }
  0xf2   : > { %457 = vmatpush.msra.mxu0 %v442_v49 }
  0xf4   : > { %458 = vmatpush.msra.mxu0 %v441_v50 }
  0xf6   : > { %459 = vmatpush.msra.mxu0 %v440_v51 }
  0xf8   : > { %460 = vmatpush.msra.mxu0 %v439_v54 }
  0xfa   : > { %461 = vmatpush.msra.mxu0 %v438_v55 }
  0xfc   : > { %462 = vmatpush.msra.mxu0 %v437_v57 }
  0xfe   : > { %463 = vmatpush.msra.mxu0 %v436_v58 }
 0x100   : > { %464 = vmatpush.msra.mxu0 %v435_v60 }
 0x102   : > { %465 = vmatpush.msra.mxu0 %v434_v61 }
 0x103   : > { %466 = vmatmul.f32.vlgmr.msra.gmra.mxu0 %v433_v62 }
 0x180   : > { %v467_v6 = vpop.f32.mrf.mxu0 }
 0x181   : > { %v480_v7 = vsel %vm479_vm4, %v467_v6, 0.0 }
 0x182   : > { %722 = vrsqrt.f32 %v480_v7  ;;  %vm488_vm5 = vcmp.eq.f32.partialorder %v480_v7, inf  ;;  %v491_v16 = vand.u32 2147483648, %v480_v7  ;;  %vm490_vm6 = vcmp.eq.f32.partialorder %v480_v7, 0.0 }
 0x188   : > { %v723_v8 = vpop.eup %722 }
 0x189   : > { %v482_v9 = vmul.f32 %v723_v8, %v480_v7 }
 0x18b   : > { %v483_v10 = vmul.f32 %v723_v8, %v482_v9 }
 0x18d   : > { %v484_v11 = vmul.f32 0.5, %v483_v10 }
 0x18f   : > { %v485_v12 = vsub.f32 1.5, %v484_v11 }
 0x191   : > { %v486_v13 = vmul.f32 %v723_v8, %v485_v12 }
 0x193   : > { %v487_v14 = vmul.f32 %v486_v13, %v480_v7 }
 0x195   : > { %v489_v17 = vsel %vm488_vm5, %v480_v7, %v487_v14 }
 0x196   : > { %v492_v18 = vsel %vm490_vm6, %v491_v16, %v489_v17 }
 0x197   : > { %v495_v19 = vsub.f32 1.2, %v492_v18  ;;  %v655_v20 = vadd.f32 -0.8, %v492_v18 }
 0x199   : > { %v497_v21 = vsel %vm494_vm7, %v495_v19, %v655_v20 }
 0x19a   : > { %v498_v22 = vmax.f32 %v497_v21, 0.0 }
 0x19c   : > { %v499_v23 = vmul.f32 0.5, %v498_v22 }
 0x19e   : > { %v500_v24 = vmul.f32 %v499_v23, %v498_v22 }
 0x1a0   : > { %v501_v26 = vsel %vm479_vm4, %v500_v24, 0.0 }
 0x1a1   : > { %v503_v27 = vadd.f32 %v502_v25, %v501_v26 }
 0x1a3   : > { %505 = vst.msk [vmem:[#allocation2] sm:$0xff] %vm352_vm0, %v503_v27 }
 0x1a4 PF: > { %v521_v37 = vlaneseq  ;;  %s657_s26 = sshll.u32 %s794_s18, 3  ;;  %s544_s13 = sshll.u32 %s298_s5, 4  ;;  %s545_s13 = int_to_ptr.vmem [resolvable:$true] %s544_s13 }
 0x1a5   : > { %s542_s11 = scalar_lea.hbm %s1068_s4, %s657_s26  ;;  %s1072_s9 = sand.u32 1, %s786_s16  }
 0x1a6   : > { %v522_v38 = vshrl.u32 %v521_v37, 7  ;;  %v524_v39 = vand.u32 127, %v521_v37  ;;  %s546_s29 = sshll.u32 %s542_s11, 4  ;;  %s532_s18 = scalar_lea.sflag [#allocation4], %s1072_s9  ;;  %s547_s29 = int_to_ptr.hbm [resolvable:$true] %s546_s29 }
 0x1a7   : > { %s738_s12 = sshra.s32 %s547_s29, 4  ;;  %s744_s7 = scalar_lea.hbm %s1068_s4, 16  ;;  %s739_s12 = int_to_ptr.hbm [resolvable:$true] %s738_s12 }
 0x1a8   : > { %vm525_vm8 = vcmp.eq.s32.totalorder %v522_v38, 0  ;;  %vm526_vm9 = vcmp.eq.s32.totalorder %v524_v39, 0  ;;  %s740_s21 = scalar_lea.hbm %s739_s12, 8  ;;  %p745_p5 = scmp.lt.s32.totalorder %s739_s12, %s1068_s4 }
 0x1a9   : > { %vm527_vm10 = vmand %vm525_vm8, %vm526_vm9  ;;  %p741_p1 = scmp.ne.s32.totalorder %s739_s12, %s740_s21  ;;  %p746_p6 = scmp.lt.s32.totalorder %s744_s7, %s740_s21 }
 0x1aa   : > { %v509_v28 = vld [vmem:[#allocation2] sm:$0xff] }
 0x1ab   : > { %v511_v29 = vsel %vm352_vm0, %v509_v28, 0.0  ;;  %p742_p2 = pnand %p741_p1, %p870_p4  ;;  %p747_p7 = por %p746_p6, %p745_p5 }
 0x1ac   : > { %512 = vadd.xlane.f32.xlu0 %v511_v29 }
 0x1ad   : > { %p743_p3 = pneg %p742_p2 }
 0x1af   : > { %p748_p9 = pnand %p747_p7, %p743_p3 }
 0x21f   : > { %v513_v30 = vpop.xlane.xlu0 %512 }
 0x220   : > { %v514_v31 = vrot.slane %v513_v30, 4 }
 0x222   : > { %v515_v32 = vadd.f32 %v514_v31, %v513_v30 }
 0x224   : > { %v516_v33 = vrot.slane %v515_v32, 2 }
 0x226   : > { %v517_v34 = vadd.f32 %v516_v33, %v515_v32 }
 0x228   : > { %v518_v35 = vrot.slane %v517_v34, 1 }
 0x22a   : > { %v519_v36 = vadd.f32 %v518_v35, %v517_v34 }
 0x22c   : > { %662 = vpush %v519_v36 }
 0x25d   : > { %s663_s14 = spop %662 }
 0x25e   : > { %v528_v40 = vstv %s663_s14 }
 0x25f   : > { %v529_v41 = vsel %vm527_vm10, %v528_v40, 0.0 }
 0x260   : > { %530 = vst [vmem:[%s298_s5] sm:$0xff] %v529_v41 }
 0x261   : > { %751 = shalt.err (!%p748_p9)
}
 0x262   : > { %664 = dma.vmem_to_hbm [thread:$0]  (%p870_p4), %s545_s13, 128, %s547_s29, %s532_s18  }
 0x263 PF: > { %p670_p10 = scmp.ge.s32.totalorder %s802_s20, 2  ;;  %s558_s30 = sand.u32 1, %s782_s15  }
 0x264   : > { %s559_s5 = scalar_lea.sflag [#allocation4], %s558_s30 }
 0x265   : > { %p667_p11 = pnand %p670_p10, %p877_p8 }
 0x267   : > { %p668_p12 = pneg %p667_p11 }
 0x269   : > { %777 = dma.done.wait (%p668_p12), %s559_s5, 128  }
 0x26a   : > { %779 = vsyncadd (%p668_p12), %s559_s5, 4294967168  ;;  %s17_s20 = sadd.s32 1, %s802_s20   ;;  %s1073_s15 = smov %s786_s16 }
 0x26b   : > { %p14_p13 = scmp.ge.s32.totalorder %s17_s20, 4   ;;  %s1074_s16 = smov %s790_s17 }
 0x26c   : > { %s1075_s17 = smov %s883_s28  ;;  %s1076_s18 = smov %s798_s19 }
 0x26d   : > { %s1077_s19 = smov %s1079_s23  ;;  %16 = sbr.rel (!%p14_p13) target bundleno = 4 (0x4), region = 93 }
 0x272   :  { %565 = vsyncpa [#allocation4], 1 }
 0x273   :  { %567 = vsyncpa [#allocation4 + $0x1], 1 }

</bundles_post_ra>
